<compile_context>
chip_gen: v7x
topology: tpu7x:2x2x1
jax: 0.10.0
libtpu: 0.0.40
codegen_flags: <defaults>
</compile_context>

<pallas_src>
import functools

import jax
import jax.numpy as jnp
from jax import lax
from jax.experimental import pallas as pl
from jax.experimental.pallas import tpu as pltpu


def _cdiv(a, b):
    return (a + b - 1) // b


def _tree_rowfold(arr):
    """Sum groups of 8 rows: (T, W) -> (8, W) via a pairwise tree of static,
    sublane-aligned (8, W) slices.  Pure VPU vreg adds, no XLU reduce."""
    t = arr.shape[0]
    parts = [arr[j * 8:(j + 1) * 8, :] for j in range(t // 8)]
    while len(parts) > 1:
        nxt = [a + b for a, b in zip(parts[0::2], parts[1::2])]
        if len(parts) % 2:
            nxt.append(parts[-1])
        parts = nxt
    return parts[0]


def _tpu_defaults():
    """Per-generation defaults: (num_partitions, per-input-per-buffer bytes, scoped-VMEM cap)."""
    kind = ""
    try:
        kind = jax.devices()[0].device_kind.lower()
    except Exception:
        pass
    if "7" in kind:
        # v7x: 2 TensorCores/chip but only 64 MiB VMEM per TC -> modest tiles,
        # scoped limit well under physical VMEM.
        return 2, 5 << 20, 48 << 20
    if "v4" in kind or "v5" in kind or "v6" in kind:
        # Single TensorCore, 128 MiB VMEM, HBM-bound -> big streaming tiles,
        # no partition split (pure overhead on one core).
        return 1, 12 << 20, 100 << 20
    # Unknown backend: conservative.
    return 1, 4 << 20, 48 << 20


def _kldiv_kernel(x_ref, at_ref, tgt_ref, loss_ref, tok_ref, iota_ref, *,
                  padding_idx, kd_weight, n_rows, row_tile, slab_rows, n_slabs,
                  blocks_per_part, total_blocks, assume_positive_teacher):
    p = pl.program_id(0)          # partition (parallel)
    i = pl.program_id(1)          # row block within partition (arbitrary)
    c = loss_ref.shape[-1]

    @pl.when(i == 0)
    def _():
        loss_ref[...] = jnp.zeros_like(loss_ref)
        tok_ref[...] = jnp.zeros_like(tok_ref)
        # Loop-invariant class indices: generated once per partition, re-read
        # from VMEM every slab (vld slots have slack; VALU often doesn't).
        iota_ref[...] = lax.broadcasted_iota(jnp.int32, iota_ref.shape, 1)

    gblk = p * blocks_per_part + i

    # Skip all compute for clamped duplicate blocks (partitions not dividing
    # the block count); the accumulators were already initialized at i == 0.
    @pl.when(gblk < total_blocks)
    def _compute():
        blk = jnp.minimum(gblk, total_blocks - 1)        # matches index_map clamp
        row_base = blk * row_tile
        slab_iota = lax.broadcasted_iota(jnp.int32, (slab_rows, 1), 0)

        def slab_body(s, carry):
            acc_l, acc_t = carry
            off = pl.multiple_of(s * slab_rows, slab_rows)
            x = x_ref[pl.ds(off, slab_rows), :].astype(jnp.float32)
            at = at_ref[pl.ds(off, slab_rows), :].astype(jnp.float32)
            tgt = tgt_ref[pl.ds(off, slab_rows), :]

            # Row validity: in-bounds (ragged N / padded last block) and
            # not the padding class.
            row_valid = (row_base + off + slab_iota) < n_rows
            row_valid = jnp.logical_and(row_valid, tgt != padding_idx)
            tgt_safe = jnp.where(row_valid, tgt, 0)      # target.masked_fill(..., 0)

            # Fused one-hot blend: td = kd*at; td += (1-kd) on the target class.
            is_tgt = iota_ref[...] == tgt_safe
            td = kd_weight * at
            td = jnp.where(is_tgt, td + (1.0 - kd_weight), td)

            if assume_positive_teacher:
                # Teacher probs strictly positive (softmax) => td > 0 on every
                # valid row; a single row-mask select suffices.  Garbage
                # out-of-bounds rows may compute NaN but the select discards it.
                kl = jnp.where(row_valid, td * (jnp.log(td) - x), 0.0)
            else:
                # Exact KLDivLoss semantics: contribution is 0 where td <= 0.
                pos = jnp.logical_and(td > 0.0, row_valid)
                safe_t = jnp.where(pos, td, 1.0)
                kl = jnp.where(pos, td * (jnp.log(safe_t) - x), 0.0)

            acc_l = acc_l + _tree_rowfold(kl)
            acc_t = acc_t + _tree_rowfold(row_valid.astype(jnp.int32))
            return acc_l, acc_t

        init = (jnp.zeros((8, c), jnp.float32), jnp.zeros((8, 1), jnp.int32))
        acc_l, acc_t = lax.fori_loop(0, n_slabs, slab_body, init,
                                     unroll=(n_slabs <= 8))

        # Accumulate directly into the resident output tiles (index_map
        # ignores i, so they live in VMEM across the arbitrary axis).
        loss_ref[...] += acc_l
        tok_ref[...] += acc_t


def kldiv_loss(x, at_prob, target, *, padding_idx, kd_weight=0.1,
               row_tile=None, slab_rows=None, num_partitions=None,
               vmem_buffer_bytes=None, assume_positive_teacher=False):
    """x: (N, C) log-probs, at_prob: (N, C) probs, target: (N,) int class ids."""
    n, c = x.shape
    assert at_prob.shape == (n, c)
    itemsize = jnp.dtype(x.dtype).itemsize

    def_parts, def_buf, vmem_cap = _tpu_defaults()
    if num_partitions is None:
        num_partitions = def_parts
    if vmem_buffer_bytes is None:
        vmem_buffer_bytes = def_buf

    # ---- row tile: big streaming tiles sized from the VMEM input budget ----
    # Per row, double-buffered: x + at + the 128-lane-padded (row,1) target column.
    bytes_per_row = 2 * (2 * c * itemsize + 128 * 4)
    if row_tile is None:
        row_tile = (4 * vmem_buffer_bytes) // max(bytes_per_row, 1)
    row_tile = max(16, (int(row_tile) // 16) * 16)
    row_tile = min(row_tile, max(16, (n // 16) * 16))

    # ---- slab: inner accumulation granularity, bounds the f32 temporaries ----
    if slab_rows is None:
        slab_rows = max(16, min(512, (1 << 20) // max(c * 4, 1)))   # ~1 MiB f32 slab
    slab_rows = max(16, (int(slab_rows) // 16) * 16)
    slab_rows = min(slab_rows, row_tile)
    row_tile = max(slab_rows, (row_tile // slab_rows) * slab_rows)
    n_slabs = row_tile // slab_rows

    total_blocks = _cdiv(n, row_tile)
    parts = max(1, min(int(num_partitions), total_blocks))
    bpp = _cdiv(total_blocks, parts)

    tgt2d = target.astype(jnp.int32).reshape(n, 1)

    def row_map(p, i):
        # Clamp duplicate blocks (masked + compute-skipped in-kernel).
        return (jnp.minimum(p * bpp + i, total_blocks - 1), 0)

    kernel = functools.partial(
        _kldiv_kernel,
        padding_idx=int(padding_idx), kd_weight=float(kd_weight),
        n_rows=n, row_tile=row_tile, slab_rows=slab_rows, n_slabs=n_slabs,
        blocks_per_part=bpp, total_blocks=total_blocks,
        assume_positive_teacher=bool(assume_positive_teacher))

    # VMEM accounting: double-buffered inputs + padded target columns (already in
    # bytes_per_row) + bounded slab temporaries + iota scratch + output partials.
    need = (row_tile * bytes_per_row            # x, at, target (2 pipeline buffers each)
            + 6 * slab_rows * c * 4             # in-flight f32 temporaries of one slab
            + slab_rows * c * 4                 # class-iota scratch
            + 2 * 8 * (c + 128) * 4)            # per-partition output tiles
    vmem_limit = int(min(max(32 << 20, need + (4 << 20)), vmem_cap))
    vmem_limit = int(max(vmem_limit, need + (2 << 20)))   # never clamp below need

    loss_parts, tok_parts = pl.pallas_call(
        kernel,
        out_shape=[jax.ShapeDtypeStruct((parts * 8, c), jnp.float32),
                   jax.ShapeDtypeStruct((parts * 8, 1), jnp.int32)],
        grid_spec=pltpu.PrefetchScalarGridSpec(
            num_scalar_prefetch=0,
            grid=(parts, bpp),
            in_specs=[
                pl.BlockSpec((row_tile, c), row_map),
                pl.BlockSpec((row_tile, c), row_map),
                pl.BlockSpec((row_tile, 1), row_map),
            ],
            out_specs=[
                pl.BlockSpec((8, c), lambda p, i: (p, 0)),
                pl.BlockSpec((8, 1), lambda p, i: (p, 0)),
            ],
            scratch_shapes=[
                pltpu.VMEM((slab_rows, c), jnp.int32),   # loop-invariant class iota
            ]),
        compiler_params=pltpu.CompilerParams(
            dimension_semantics=("parallel", "arbitrary"),
            vmem_limit_bytes=vmem_limit),
    )(x, at_prob, tgt2d)

    tokens = jnp.sum(tok_parts).astype(jnp.float32)
    # max(tokens, 1): safe when every row is padding (spec would divide by 0).
    return jnp.sum(loss_parts) / jnp.maximum(tokens, 1.0)


def _reference(x, at_prob, target, padding_idx, kd_weight):
    n, c = x.shape
    mask = target != padding_idx
    tokens = jnp.sum(mask.astype(jnp.float32))
    tgt_safe = jnp.where(mask, target, 0)
    true_dist = jax.nn.one_hot(tgt_safe, c, dtype=jnp.float32)
    target_dist = (1.0 - kd_weight) * true_dist + kd_weight * at_prob.astype(jnp.float32)
    pos = target_dist > 0
    kl = jnp.where(pos, target_dist * (jnp.log(jnp.where(pos, target_dist, 1.0))
                                       - x.astype(jnp.float32)), 0.0)
    kl = jnp.where(mask[:, None], kl, 0.0)
    return jnp.sum(kl) / tokens


if __name__ == "__main__":
    key = jax.random.PRNGKey(0)
    k1, k2, k3, k4, k5, k6, k7, k8, k9 = jax.random.split(key, 9)

    PADDING_IDX = 0
    KD_WEIGHT = 0.1

    # --- test 1: small case, single block / single partition, exact semantics ---
    N1, C1 = 64, 128
    x1 = jax.nn.log_softmax(jax.random.normal(k1, (N1, C1), jnp.float32), axis=-1)
    at1 = jax.nn.softmax(jax.random.normal(k2, (N1, C1), jnp.float32), axis=-1)
    t1 = jax.random.randint(k3, (N1,), 0, C1, dtype=jnp.int32)
    t1 = t1.at[3].set(PADDING_IDX).at[11].set(PADDING_IDX)

    out1 = jax.block_until_ready(
        kldiv_loss(x1, at1, t1, padding_idx=PADDING_IDX, kd_weight=KD_WEIGHT))
    ref1 = _reference(x1, at1, t1, PADDING_IDX, KD_WEIGHT)
    assert jnp.allclose(out1, ref1, rtol=1e-5, atol=1e-5), (out1, ref1)

    # --- test 2: multi-partition grid, ragged N, clamped duplicate block,
    #             positive-teacher fast path ---------------------------------
    N2, C2 = 120, 256
    x2 = jax.nn.log_softmax(jax.random.normal(k4, (N2, C2), jnp.float32), axis=-1)
    at2 = jax.nn.softmax(jax.random.normal(k5, (N2, C2), jnp.float32), axis=-1)
    t2 = jax.random.randint(k6, (N2,), 0, C2, dtype=jnp.int32)
    t2 = t2.at[0].set(PADDING_IDX).at[57].set(PADDING_IDX).at[119].set(PADDING_IDX)

    out2 = jax.block_until_ready(
        kldiv_loss(x2, at2, t2, padding_idx=PADDING_IDX, kd_weight=KD_WEIGHT,
                   row_tile=48, num_partitions=2, assume_positive_teacher=True))
    ref2 = _reference(x2, at2, t2, PADDING_IDX, KD_WEIGHT)
    assert jnp.allclose(out2, ref2, rtol=1e-5, atol=1e-5), (out2, ref2)

    # --- test 3: multi-slab accumulation (rolled fori_loop, dynamic slab slices) ---
    N3, C3 = 160, 128
    x3 = jax.nn.log_softmax(jax.random.normal(k7, (N3, C3), jnp.float32), axis=-1)
    at3 = jax.nn.softmax(jax.random.normal(k8, (N3, C3), jnp.float32), axis=-1)
    t3 = jax.random.randint(k9, (N3,), 0, C3, dtype=jnp.int32)
    t3 = t3.at[5].set(PADDING_IDX).at[100].set(PADDING_IDX)

    out3 = jax.block_until_ready(
        kldiv_loss(x3, at3, t3, padding_idx=PADDING_IDX, kd_weight=KD_WEIGHT,
                   row_tile=160, slab_rows=16, num_partitions=1))
    ref3 = _reference(x3, at3, t3, PADDING_IDX, KD_WEIGHT)
    assert jnp.allclose(out3, ref3, rtol=1e-5, atol=1e-5), (out3, ref3)

    # --- test 3b: multi-slab, short loop -> fully unrolled path ---------------
    out3b = jax.block_until_ready(
        kldiv_loss(x3, at3, t3, padding_idx=PADDING_IDX, kd_weight=KD_WEIGHT,
                   row_tile=160, slab_rows=32, num_partitions=1,
                   assume_positive_teacher=True))
    assert jnp.allclose(out3b, ref3, rtol=1e-5, atol=1e-5), (out3b, ref3)

    # --- test 4: bf16 inputs (half HBM traffic), kernel upcasts to f32 --------
    out4 = jax.block_until_ready(
        kldiv_loss(x1.astype(jnp.bfloat16), at1.astype(jnp.bfloat16), t1,
                   padding_idx=PADDING_IDX, kd_weight=KD_WEIGHT))
    ref4 = _reference(x1.astype(jnp.bfloat16), at1.astype(jnp.bfloat16),
                      t1, PADDING_IDX, KD_WEIGHT)
    assert jnp.allclose(out4, ref4, rtol=1e-4, atol=1e-4), (out4, ref4)

    print("KERNEL_OK")
</pallas_src>

<mosaic_0001>
module attributes {stable_mosaic.version = 11 : i64} {
  func.func @_kldiv_kernel(%arg0: i32, %arg1: i32, %arg2: memref<64x128xf32, #tpu.memory_space<vmem>>, %arg3: memref<64x128xf32, #tpu.memory_space<vmem>>, %arg4: memref<64x1xi32, #tpu.memory_space<vmem>>, %arg5: memref<8x128xf32, #tpu.memory_space<vmem>>, %arg6: memref<8x1xi32, #tpu.memory_space<vmem>>, %arg7: memref<64x128xi32, #tpu.memory_space<vmem>>) attributes {dimension_semantics = [#tpu.dimension_semantics<parallel>, #tpu.dimension_semantics<arbitrary>], iteration_bounds = array<i64: 1, 1>, scalar_prefetch = 0 : i64, scratch_operands = 1 : i64, tpu.core_type = #tpu.core_type<tc>, window_params = [{transform_indices = @transform_0, window_bounds = array<i64: 64, 128>}, {transform_indices = @transform_1, window_bounds = array<i64: 64, 128>}, {transform_indices = @transform_2, window_bounds = array<i64: 64, 1>}, {transform_indices = @transform_3, window_bounds = array<i64: 8, 128>}, {transform_indices = @transform_4, window_bounds = array<i64: 8, 1>}]} {
    %c0_i32 = arith.constant 0 : i32
    %0 = arith.cmpi eq, %arg1, %c0_i32 : i32
    %1 = arith.extui %0 : i1 to i32
    %c0_i32_0 = arith.constant 0 : i32
    %2 = arith.cmpi ne, %1, %c0_i32_0 : i32
    scf.if %2 {
      %cst = arith.constant 0.000000e+00 : f32
      %8 = vector.broadcast %cst : f32 to vector<8x128xf32>
      %c0 = arith.constant 0 : index
      %c0_3 = arith.constant 0 : index
      %9 = vector.load %arg5[%c0, %c0_3] : memref<8x128xf32, #tpu.memory_space<vmem>>, vector<8x128xf32>
      tpu.vector_store %arg5[%c0, %c0_3], %8 {strides = array<i32>} : memref<8x128xf32, #tpu.memory_space<vmem>>, vector<8x128xf32>,
      %c0_i32_4 = arith.constant 0 : i32
      %10 = vector.broadcast %c0_i32_4 : i32 to vector<8x1xi32>
      %c0_5 = arith.constant 0 : index
      %c0_6 = arith.constant 0 : index
      %11 = vector.load %arg6[%c0_5, %c0_6] : memref<8x1xi32, #tpu.memory_space<vmem>>, vector<8x1xi32>
      tpu.vector_store %arg6[%c0_5, %c0_6], %10 {strides = array<i32>} : memref<8x1xi32, #tpu.memory_space<vmem>>, vector<8x1xi32>,
      %12 = tpu.iota {dimensions = array<i32: 1>} : vector<64x128xi32>
      %c0_7 = arith.constant 0 : index
      %c0_8 = arith.constant 0 : index
      %13 = vector.load %arg7[%c0_7, %c0_8] : memref<64x128xi32, #tpu.memory_space<vmem>>, vector<64x128xi32>
      tpu.vector_store %arg7[%c0_7, %c0_8], %12 {strides = array<i32>} : memref<64x128xi32, #tpu.memory_space<vmem>>, vector<64x128xi32>,
    } else {
    }
    %c1_i32 = arith.constant 1 : i32
    %3 = arith.muli %arg0, %c1_i32 : i32
    %4 = arith.addi %3, %arg1 : i32
    %c1_i32_1 = arith.constant 1 : i32
    %5 = arith.cmpi slt, %4, %c1_i32_1 : i32
    %6 = arith.extui %5 : i1 to i32
    %c0_i32_2 = arith.constant 0 : i32
    %7 = arith.cmpi ne, %6, %c0_i32_2 : i32
    scf.if %7 {
      %c0_i32_3 = arith.constant 0 : i32
      %8 = arith.minsi %4, %c0_i32_3 : i32
      %c64_i32 = arith.constant 64 : i32
      %9 = arith.muli %8, %c64_i32 : i32
      %10 = tpu.iota {dimensions = array<i32: 0>} : vector<64x1xi32>
      %cst = arith.constant 0.000000e+00 : f32
      %11 = vector.broadcast %cst : f32 to vector<8x128xf32>
      %c0_i32_4 = arith.constant 0 : i32
      %12 = vector.broadcast %c0_i32_4 : i32 to vector<8x1xi32>
      %c0_i32_5 = arith.constant 0 : i32
      %c64_i32_6 = arith.constant 64 : i32
      %13 = arith.muli %c0_i32_5, %c64_i32_6 : i32
      %14 = tpu.assume_multiple %13, 64 : i32
      %15 = arith.index_cast %14 : i32 to index
      %c0 = arith.constant 0 : index
      %16 = vector.load %arg2[%15, %c0] : memref<64x128xf32, #tpu.memory_space<vmem>>, vector<64x128xf32>
      %17 = arith.index_cast %14 : i32 to index
      %c0_7 = arith.constant 0 : index
      %18 = vector.load %arg3[%17, %c0_7] : memref<64x128xf32, #tpu.memory_space<vmem>>, vector<64x128xf32>
      %19 = arith.index_cast %14 : i32 to index
      %c0_8 = arith.constant 0 : index
      %20 = vector.load %arg4[%19, %c0_8] : memref<64x1xi32, #tpu.memory_space<vmem>>, vector<64x1xi32>
      %21 = arith.addi %9, %14 : i32
      %22 = vector.broadcast %21 : i32 to vector<64x1xi32>
      %23 = arith.addi %22, %10 : vector<64x1xi32>
      %c64_i32_9 = arith.constant 64 : i32
      %24 = vector.broadcast %c64_i32_9 : i32 to vector<64x1xi32>
      %25 = arith.cmpi slt, %23, %24 : vector<64x1xi32>
      %c0_i32_10 = arith.constant 0 : i32
      %26 = vector.broadcast %c0_i32_10 : i32 to vector<64x1xi32>
      %27 = arith.cmpi ne, %20, %26 : vector<64x1xi32>
      %28 = arith.andi %25, %27 : vector<64x1xi1>
      %c0_i32_11 = arith.constant 0 : i32
      %29 = vector.broadcast %c0_i32_11 : i32 to vector<64x1xi32>
      %30 = arith.select %28, %20, %29 : vector<64x1xi1>, vector<64x1xi32>
      %c0_12 = arith.constant 0 : index
      %c0_13 = arith.constant 0 : index
      %31 = vector.load %arg7[%c0_12, %c0_13] : memref<64x128xi32, #tpu.memory_space<vmem>>, vector<64x128xi32>
      %32 = vector.broadcast %30 : vector<64x1xi32> to vector<64x128xi32>
      %33 = arith.cmpi eq, %31, %32 : vector<64x128xi32>
      %cst_14 = arith.constant 1.000000e-01 : f32
      %34 = vector.broadcast %cst_14 : f32 to vector<64x128xf32>
      %35 = arith.mulf %34, %18 : vector<64x128xf32>
      %cst_15 = arith.constant 0.899999976 : f32
      %36 = vector.broadcast %cst_15 : f32 to vector<64x128xf32>
      %37 = arith.addf %35, %36 : vector<64x128xf32>
      %38 = arith.select %33, %37, %35 : vector<64x128xi1>, vector<64x128xf32>
      %cst_16 = arith.constant 0.000000e+00 : f32
      %39 = vector.broadcast %cst_16 : f32 to vector<64x128xf32>
      %40 = arith.cmpf ogt, %38, %39 : vector<64x128xf32>
      %41 = vector.broadcast %28 : vector<64x1xi1> to vector<64x128xi1>
      %42 = arith.andi %40, %41 : vector<64x128xi1>
      %cst_17 = arith.constant 1.000000e+00 : f32
      %43 = vector.broadcast %cst_17 : f32 to vector<64x128xf32>
      %44 = arith.select %42, %38, %43 : vector<64x128xi1>, vector<64x128xf32>
      %45 = math.log %44 : vector<64x128xf32>
      %46 = arith.subf %45, %16 : vector<64x128xf32>
      %47 = arith.mulf %38, %46 : vector<64x128xf32>
      %cst_18 = arith.constant 0.000000e+00 : f32
      %48 = vector.broadcast %cst_18 : f32 to vector<64x128xf32>
      %49 = arith.select %42, %47, %48 : vector<64x128xi1>, vector<64x128xf32>
      %50 = vector.extract_strided_slice %49 {offsets = [0, 0], sizes = [8, 128], strides = [1, 1]} : vector<64x128xf32> to vector<8x128xf32>
      %51 = vector.extract_strided_slice %49 {offsets = [8, 0], sizes = [8, 128], strides = [1, 1]} : vector<64x128xf32> to vector<8x128xf32>
      %52 = vector.extract_strided_slice %49 {offsets = [16, 0], sizes = [8, 128], strides = [1, 1]} : vector<64x128xf32> to vector<8x128xf32>
      %53 = vector.extract_strided_slice %49 {offsets = [24, 0], sizes = [8, 128], strides = [1, 1]} : vector<64x128xf32> to vector<8x128xf32>
      %54 = vector.extract_strided_slice %49 {offsets = [32, 0], sizes = [8, 128], strides = [1, 1]} : vector<64x128xf32> to vector<8x128xf32>
      %55 = vector.extract_strided_slice %49 {offsets = [40, 0], sizes = [8, 128], strides = [1, 1]} : vector<64x128xf32> to vector<8x128xf32>
      %56 = vector.extract_strided_slice %49 {offsets = [48, 0], sizes = [8, 128], strides = [1, 1]} : vector<64x128xf32> to vector<8x128xf32>
      %57 = vector.extract_strided_slice %49 {offsets = [56, 0], sizes = [8, 128], strides = [1, 1]} : vector<64x128xf32> to vector<8x128xf32>
      %58 = arith.addf %50, %51 : vector<8x128xf32>
      %59 = arith.addf %52, %53 : vector<8x128xf32>
      %60 = arith.addf %54, %55 : vector<8x128xf32>
      %61 = arith.addf %56, %57 : vector<8x128xf32>
      %62 = arith.addf %58, %59 : vector<8x128xf32>
      %63 = arith.addf %60, %61 : vector<8x128xf32>
      %64 = arith.addf %62, %63 : vector<8x128xf32>
      %65 = arith.addf %11, %64 : vector<8x128xf32>
      %66 = arith.extui %28 : vector<64x1xi1> to vector<64x1xi32>
      %67 = vector.extract_strided_slice %66 {offsets = [0, 0], sizes = [8, 1], strides = [1, 1]} : vector<64x1xi32> to vector<8x1xi32>
      %68 = vector.extract_strided_slice %66 {offsets = [8, 0], sizes = [8, 1], strides = [1, 1]} : vector<64x1xi32> to vector<8x1xi32>
      %69 = vector.extract_strided_slice %66 {offsets = [16, 0], sizes = [8, 1], strides = [1, 1]} : vector<64x1xi32> to vector<8x1xi32>
      %70 = vector.extract_strided_slice %66 {offsets = [24, 0], sizes = [8, 1], strides = [1, 1]} : vector<64x1xi32> to vector<8x1xi32>
      %71 = vector.extract_strided_slice %66 {offsets = [32, 0], sizes = [8, 1], strides = [1, 1]} : vector<64x1xi32> to vector<8x1xi32>
      %72 = vector.extract_strided_slice %66 {offsets = [40, 0], sizes = [8, 1], strides = [1, 1]} : vector<64x1xi32> to vector<8x1xi32>
      %73 = vector.extract_strided_slice %66 {offsets = [48, 0], sizes = [8, 1], strides = [1, 1]} : vector<64x1xi32> to vector<8x1xi32>
      %74 = vector.extract_strided_slice %66 {offsets = [56, 0], sizes = [8, 1], strides = [1, 1]} : vector<64x1xi32> to vector<8x1xi32>
      %75 = arith.addi %67, %68 : vector<8x1xi32>
      %76 = arith.addi %69, %70 : vector<8x1xi32>
      %77 = arith.addi %71, %72 : vector<8x1xi32>
      %78 = arith.addi %73, %74 : vector<8x1xi32>
      %79 = arith.addi %75, %76 : vector<8x1xi32>
      %80 = arith.addi %77, %78 : vector<8x1xi32>
      %81 = arith.addi %79, %80 : vector<8x1xi32>
      %82 = arith.addi %12, %81 : vector<8x1xi32>
      %c1_i32_19 = arith.constant 1 : i32
      %c0_20 = arith.constant 0 : index
      %c0_21 = arith.constant 0 : index
      %83 = vector.load %arg5[%c0_20, %c0_21] : memref<8x128xf32, #tpu.memory_space<vmem>>, vector<8x128xf32>
      %84 = arith.addf %83, %65 : vector<8x128xf32>
      %c0_22 = arith.constant 0 : index
      %c0_23 = arith.constant 0 : index
      %85 = vector.load %arg5[%c0_22, %c0_23] : memref<8x128xf32, #tpu.memory_space<vmem>>, vector<8x128xf32>
      tpu.vector_store %arg5[%c0_22, %c0_23], %84 {strides = array<i32>} : memref<8x128xf32, #tpu.memory_space<vmem>>, vector<8x128xf32>,
      %c0_24 = arith.constant 0 : index
      %c0_25 = arith.constant 0 : index
      %86 = vector.load %arg6[%c0_24, %c0_25] : memref<8x1xi32, #tpu.memory_space<vmem>>, vector<8x1xi32>
      %87 = arith.addi %86, %82 : vector<8x1xi32>
      %c0_26 = arith.constant 0 : index
      %c0_27 = arith.constant 0 : index
      %88 = vector.load %arg6[%c0_26, %c0_27] : memref<8x1xi32, #tpu.memory_space<vmem>>, vector<8x1xi32>
      tpu.vector_store %arg6[%c0_26, %c0_27], %87 {strides = array<i32>} : memref<8x1xi32, #tpu.memory_space<vmem>>, vector<8x1xi32>,
    } else {
    }
    return
  }
  func.func @transform_0(%arg0: i32, %arg1: i32) -> (i32, i32) {
    %c1_i32 = arith.constant 1 : i32
    %0 = arith.muli %arg0, %c1_i32 : i32
    %1 = arith.addi %0, %arg1 : i32
    %c0_i32 = arith.constant 0 : i32
    %2 = arith.minsi %1, %c0_i32 : i32
    %c0_i32_0 = arith.constant 0 : i32
    %c0_i32_1 = arith.constant 0 : i32
    return %2, %c0_i32_0 : i32, i32
  }
  func.func @transform_1(%arg0: i32, %arg1: i32) -> (i32, i32) {
    %c1_i32 = arith.constant 1 : i32
    %0 = arith.muli %arg0, %c1_i32 : i32
    %1 = arith.addi %0, %arg1 : i32
    %c0_i32 = arith.constant 0 : i32
    %2 = arith.minsi %1, %c0_i32 : i32
    %c0_i32_0 = arith.constant 0 : i32
    %c0_i32_1 = arith.constant 0 : i32
    return %2, %c0_i32_0 : i32, i32
  }
  func.func @transform_2(%arg0: i32, %arg1: i32) -> (i32, i32) {
    %c1_i32 = arith.constant 1 : i32
    %0 = arith.muli %arg0, %c1_i32 : i32
    %1 = arith.addi %0, %arg1 : i32
    %c0_i32 = arith.constant 0 : i32
    %2 = arith.minsi %1, %c0_i32 : i32
    %c0_i32_0 = arith.constant 0 : i32
    %c0_i32_1 = arith.constant 0 : i32
    return %2, %c0_i32_0 : i32, i32
  }
  func.func @transform_3(%arg0: i32, %arg1: i32) -> (i32, i32) {
    %c0_i32 = arith.constant 0 : i32
    %c0_i32_0 = arith.constant 0 : i32
    return %arg0, %c0_i32 : i32, i32
  }
  func.func @transform_4(%arg0: i32, %arg1: i32) -> (i32, i32) {
    %c0_i32 = arith.constant 0 : i32
    %c0_i32_0 = arith.constant 0 : i32
    return %arg0, %c0_i32 : i32, i32
  }
}

</mosaic_0001>

<bundles_post_ra>
// kernel: tpu_custom_call.1
= control target key start
LH: loop header
LB: loop body
LE: loop exit
PB: predicated region body
PF: predicated region fallthrough
CT: control target
= control target key end

     0   :  { %10 = vsyncpa [#allocation4], 0  ;;  %s736_s0 = inlined_call_operand.vmem [shape: f32[64,128], index: 0, kind: input, shape index: {}]   ;;  %s737_s1 = inlined_call_operand.hbm [shape: f32[64,128], index: 1, kind: input, shape index: {}]   ;;  %s738_s2 = inlined_call_operand.vmem [shape: s32[64,1], index: 2, kind: input, shape index: {}]   ;;  %s739_s3 = inlined_call_operand.hbm [shape: f32[8,128], index: 3, kind: output, shape index: {0}]   ;;  %s740_s4 = inlined_call_operand.vmem [shape: s32[8,1], index: 4, kind: output, shape index: {1}]  }
   0x1   :  { %11 = vsyncpa [#allocation5], 0  ;;  %s500_s15 = smov [#allocation3]   ;;  %s452_s19 = scalar_lea.hbm %s737_s1, 1024 }
   0x2   :  { %s37_s16 = sshll.u32 %s500_s15, 4  ;;  %p453_p0 = scmp.ne.s32.totalorder %s737_s1, %s452_s19  ;;  %s38_s16 = int_to_ptr.vmem [resolvable:$true] %s37_s16 }
   0x3   :  { %p456_p1 = scmp.lt.u32.totalorder %s452_s19, %s737_s1 }
   0x5   :  { %p458_p2 = pnand %p456_p1, %p453_p0 }
   0x7   :  { %461 = shalt.err (!%p458_p2)
}
   0x8   :  { %s462_s24 = scalar_lea.vmem %s38_s16, 1024  ;;  %p467_p4 = scmp.lt.s32.totalorder %s38_s16, %s38_s16 }
   0x9   :  { %p463_p3 = scmp.ne.s32.totalorder %s38_s16, %s462_s24  ;;  %p468_p5 = scmp.lt.s32.totalorder %s462_s24, %s462_s24 }
   0xb   :  { %p469_p6 = por %p468_p5, %p467_p4 }
   0xd   :  { %p470_p7 = pnand %p469_p6, %p463_p3 }
   0xf   :  { %473 = shalt.err (!%p470_p7)
}
  0x10   :  { %s501_s25 = smov 128   ;;  %s502_s26 = smov 8  }
  0x11   :  { %43 = dma.hbm_to_vmem [thread:$0]  %s737_s1, 1024, %s38_s16, [#allocation4], %s501_s25, %s501_s25, %s502_s26  }
  0x12   :  { %496 = dma.done.wait [#allocation4], 1024  }
  0x13   :  { %497 = vsyncadd [#allocation4], 4294966272  ;;  %vm110_vm0 = vcmask 7168   ;;  %v503_v0 = vmov 0   ;;  %v157_v1 = vld [vmem:[%s738_s2 + $0x10] sm:$0xff]  ;;  %v155_v2 = vld [vmem:[%s738_s2] sm:$0xff]  ;;  %v112_v37 = vlaneseq }
  0x14   :  { %435 = vset.pattern.permute.xlu1 %v503_v0  ;;  %434 = vset.pattern.permute.xlu0 %v503_v0  ;;  %111 = vst.msk [vmem:[%s740_s4] sm:$0xff] %vm110_vm0, %v503_v0  ;;  %v158_v3 = vld [vmem:[%s738_s2 + $0x18] sm:$0xff]  ;;  %vm183_vm1 = vcmp.ne.s32.totalorder %v157_v1, 0  ;;  %vm181_vm2 = vcmp.ne.s32.totalorder %v155_v2, 0  ;;  %v156_v4 = vld [vmem:[%s738_s2 + $0x8] sm:$0xff]  ;;  %v159_v6 = vld [vmem:[%s738_s2 + $0x20] sm:$0xff] }
  0x15   :  { %vm184_vm3 = vcmp.ne.s32.totalorder %v158_v3, 0  ;;  %v160_v5 = vld [vmem:[%s738_s2 + $0x28] sm:$0xff]  ;;  %v199_v7 = vsel %vm183_vm1, %v157_v1, 0  ;;  %v197_v8 = vsel %vm181_vm2, %v155_v2, 0  ;;  %vm182_vm4 = vcmp.ne.s32.totalorder %v156_v4, 0  ;;  %v162_v9 = vld [vmem:[%s738_s2 + $0x38] sm:$0xff] }
  0x16   :  { %v161_v10 = vld [vmem:[%s738_s2 + $0x30] sm:$0xff]  ;;  %220 = vperm.xlu1 %435, %v199_v7   ;;  %214 = vperm.xlu0 %434, %v197_v8   ;;  %v200_v11 = vsel %vm184_vm3, %v158_v3, 0  ;;  %v198_v12 = vsel %vm182_vm4, %v156_v4, 0  ;;  %vm186_vm5 = vcmp.ne.s32.totalorder %v160_v5, 0  ;;  %vm185_vm6 = vcmp.ne.s32.totalorder %v159_v6, 0  ;;  %v148_v36 = vld [vmem:[#allocation3 + $0x8] sm:$0xff] }
  0x17   :  { %vm188_vm7 = vcmp.ne.s32.totalorder %v162_v9, 0  ;;  %vm187_vm8 = vcmp.ne.s32.totalorder %v161_v10, 0  ;;  %v278_v13 = vsel %vm182_vm4, 1, %v503_v0  ;;  %v277_v14 = vsel %vm181_vm2, 1, %v503_v0  ;;  %v147_v38 = vld [vmem:[#allocation3] sm:$0xff]  ;;  %v150_v43 = vld [vmem:[#allocation3 + $0x18] sm:$0xff] }
  0x18   :  { %v280_v15 = vsel %vm184_vm3, 1, %v503_v0  ;;  %v381_v16 = vadd.s32 %v278_v13, %v277_v14  ;;  %v279_v17 = vsel %vm183_vm1, 1, %v503_v0  ;;  %v282_v18 = vsel %vm186_vm5, 1, %v503_v0  ;;  %v149_v45 = vld [vmem:[#allocation3 + $0x10] sm:$0xff]  ;;  %v152_v52 = vld [vmem:[#allocation3 + $0x28] sm:$0xff]  ;;  %v151_v53 = vld [vmem:[#allocation3 + $0x20] sm:$0xff] }
  0x19   :  { %v281_v19 = vsel %vm185_vm6, 1, %v503_v0  ;;  %v382_v20 = vadd.s32 %v280_v15, %v279_v17  ;;  %v284_v22 = vsel %vm188_vm7, 1, %v503_v0  ;;  %v283_v23 = vsel %vm187_vm8, 1, %v503_v0  ;;  %v154_v59 = vld [vmem:[#allocation3 + $0x38] sm:$0xff]  ;;  %v153_v63 = vld [vmem:[#allocation3 + $0x30] sm:$0xff] }
  0x1a   :  { %223 = vperm.xlu1 %435, %v200_v11   ;;  %217 = vperm.xlu0 %434, %v198_v12   ;;  %v383_v21 = vadd.s32 %v282_v18, %v281_v19  ;;  %v202_v24 = vsel %vm186_vm5, %v160_v5, 0  ;;  %v201_v25 = vsel %vm185_vm6, %v159_v6, 0  ;;  %v384_v26 = vadd.s32 %v284_v22, %v283_v23 }
  0x1b   :  { %v385_v27 = vadd.s32 %v382_v20, %v381_v16  ;;  %v391_v29 = vld [vmem:[%s740_s4] sm:$0xff]  ;;  %v204_v30 = vsel %vm188_vm7, %v162_v9, 0  ;;  %v203_v31 = vsel %vm187_vm8, %v161_v10, 0  ;;  %v246_v41 = vmul.f32 0.1, %v148_v36 }
  0x1c   :  { %v386_v28 = vadd.s32 %v384_v26, %v383_v21  ;;  %v245_v42 = vmul.f32 0.1, %v147_v38  ;;  %v591_v44 = vand.u32 127, %v112_v37  ;;  %v248_v48 = vmul.f32 0.1, %v150_v43  ;;  %v141_v43 = vld [vmem:[%s736_s0 + $0x10] sm:$0xff] }
  0x1d   :  { %v254_v49 = vadd.f32 0.9, %v246_v41  ;;  %v247_v50 = vmul.f32 0.1, %v149_v45  ;;  %v250_v58 = vmul.f32 0.1, %v152_v52 }
  0x1e   :  { %229 = vperm.xlu1 %435, %v202_v24   ;;  %226 = vperm.xlu0 %434, %v201_v25   ;;  %v387_v32 = vadd.s32 %v386_v28, %v385_v27  ;;  %v253_v51 = vadd.f32 0.9, %v245_v42  ;;  %v256_v56 = vadd.f32 0.9, %v248_v48  ;;  %v249_v62 = vmul.f32 0.1, %v151_v53 }
  0x1f   :  { %v255_v60 = vadd.f32 0.9, %v247_v50  ;;  %v252_v2 = vmul.f32 0.1, %v154_v59  ;;  %v258_v4 = vadd.f32 0.9, %v250_v58 }
  0x20   :  { %v392_v33 = vadd.s32 %v391_v29, %v387_v32  ;;  %v251_v5 = vmul.f32 0.1, %v153_v63  ;;  %v257_v8 = vadd.f32 0.9, %v249_v62 }
  0x22   :  { %235 = vperm.xlu1 %435, %v204_v30   ;;  %232 = vperm.xlu0 %434, %v203_v31   ;;  %394 = vst.msk [vmem:[%s740_s4] sm:$0xff] %vm110_vm0, %v392_v33  ;;  %v259_v16 = vadd.f32 0.9, %v251_v5 }
  0x26   :  { %289 = vperm.xlu1 %435, %v278_v13   ;;  %286 = vperm.xlu0 %434, %v277_v14   ;;  %v260_v14 = vadd.f32 0.9, %v252_v2 }
  0x2a   :  { %295 = vperm.xlu1 %435, %v280_v15   ;;  %292 = vperm.xlu0 %434, %v279_v17  }
  0x2e   :  { %301 = vperm.xlu1 %435, %v282_v18   ;;  %298 = vperm.xlu0 %434, %v281_v19  }
  0x32   :  { %307 = vperm.xlu1 %435, %v284_v22   ;;  %304 = vperm.xlu0 %434, %v283_v23  }
  0x95   :  { %v221_v34 = vpop.permute.xlu1 %220  ;;  %v215_v35 = vpop.permute.xlu0 %214 }
  0x96   :  { %vm237_vm10 = vcmp.eq.s32.totalorder %v591_v44, %v215_v35  ;;  %vm239_vm12 = vcmp.eq.s32.totalorder %v591_v44, %v221_v34 }
  0x97   :  { %v597_v61 = vsel %vm237_vm10, %v253_v51, %v245_v42  ;;  %v609_v7 = vsel %vm239_vm12, %v255_v60, %v247_v50  ;;  %v144_v51 = vld [vmem:[%s736_s0 + $0x28] sm:$0xff] }
  0x98   :  { %vm269_vm1 = vcmp.gt.f32.partialorder %v597_v61, 0.0 }
  0x99   :  { %v224_v39 = vpop.permute.xlu1 %223  ;;  %v218_v40 = vpop.permute.xlu0 %217 }
  0x9a   :  { %vm238_vm9 = vcmp.eq.s32.totalorder %v591_v44, %v218_v40  ;;  %vm240_vm11 = vcmp.eq.s32.totalorder %v591_v44, %v224_v39 }
  0x9b   :  { %v595_v57 = vsel %vm238_vm9, %v254_v49, %v246_v41  ;;  %v602_v3 = vsel %vm240_vm11, %v256_v56, %v248_v48  ;;  %vm271_vm9 = vcmp.gt.f32.partialorder %v609_v7, 0.0  ;;  %v142_v41 = vld [vmem:[%s736_s0 + $0x18] sm:$0xff] }
  0x9c   :  { %vm270_vm13 = vcmp.gt.f32.partialorder %v595_v57, 0.0  ;;  %vm272_vm5 = vcmp.gt.f32.partialorder %v602_v3, 0.0 }
  0x9d   :  { %v230_v46 = vpop.permute.xlu1 %229  ;;  %v227_v47 = vpop.permute.xlu0 %226 }
  0x9e   :  { %vm242_vm2 = vcmp.eq.s32.totalorder %v591_v44, %v230_v46  ;;  %vm241_vm4 = vcmp.eq.s32.totalorder %v591_v44, %v227_v47  ;;  %v139_v47 = vld [vmem:[%s736_s0] sm:$0xff] }
  0x9f   :  { %v624_v15 = vsel %vm242_vm2, %v258_v4, %v250_v58  ;;  %v631_v18 = vsel %vm241_vm4, %v257_v8, %v249_v62  ;;  %v145_v8 = vld [vmem:[%s736_s0 + $0x30] sm:$0xff] }
  0xa0   :  { %vm273_vm2 = vcmp.gt.f32.partialorder %v631_v18, 0.0 }
  0xa1   :  { %v236_v54 = vpop.permute.xlu1 %235  ;;  %v233_v55 = vpop.permute.xlu0 %232 }
  0xa2   :  { %vm244_vm10 = vcmp.eq.s32.totalorder %v591_v44, %v236_v54  ;;  %vm243_vm12 = vcmp.eq.s32.totalorder %v591_v44, %v233_v55  ;;  %v140_v44 = vld [vmem:[%s736_s0 + $0x8] sm:$0xff]  ;;  %v143_v55 = vld [vmem:[%s736_s0 + $0x20] sm:$0xff] }
  0xa3   :  { %v268_v24 = vsel %vm244_vm10, %v260_v14, %v252_v2  ;;  %v651_v26 = vsel %vm243_vm12, %v259_v16, %v251_v5 }
  0xa4   :  { %vm275_vm10 = vcmp.gt.f32.partialorder %v651_v26, 0.0 }
  0xa5   :  { %v290_v0 = vpop.permute.xlu1 %289  ;;  %v287_v1 = vpop.permute.xlu0 %286 }
  0xa6   :  { %vm310_vm14 = vcmp.eq.s32.totalorder %v290_v0, 1  ;;  %vm309_vm15 = vcmp.eq.s32.totalorder %v287_v1, 1  ;;  %v146_v1 = vld [vmem:[%s736_s0 + $0x38] sm:$0xff]  ;;  %s504_s0 = smov [#allocation6]  }
  0xa7   :  { %vm604_vm0 = vmand %vm270_vm13, %vm310_vm14  ;;  %vm274_vm13 = vcmp.gt.f32.partialorder %v624_v15, 0.0  ;;  %s401_s11 = sshll.u32 %s504_s0, 4  ;;  %s402_s11 = int_to_ptr.vmem [resolvable:$true] %s401_s11 }
  0xa8   :  { %v326_v9 = vsel %vm604_vm0, %v595_v57, 1.0  ;;  %vm615_vm3 = vmand %vm269_vm1, %vm309_vm15  ;;  %s474_s12 = scalar_lea.vmem %s402_s11, 128  ;;  %p479_p9 = scmp.lt.s32.totalorder %s402_s11, %s402_s11 }
  0xa9   :  { %v325_v11 = vsel %vm615_vm3, %v597_v61, 1.0  ;;  %v296_v12 = vpop.permute.xlu1 %295  ;;  %v293_v13 = vpop.permute.xlu0 %292  ;;  %436 = vlog2.f32 %v326_v9  ;;  %p475_p8 = scmp.ne.s32.totalorder %s402_s11, %s474_s12  ;;  %p480_p10 = scmp.lt.s32.totalorder %s474_s12, %s474_s12 }
  0xaa   :  { %vm312_vm6 = vcmp.eq.s32.totalorder %v296_v12, 1  ;;  %vm311_vm7 = vcmp.eq.s32.totalorder %v293_v13, 1  ;;  %438 = vlog2.f32 %v325_v11 }
  0xab   :  { %vm626_vm8 = vmand %vm272_vm5, %vm312_vm6  ;;  %vm276_vm5 = vcmp.gt.f32.partialorder %v268_v24, 0.0  ;;  %p481_p11 = por %p480_p10, %p479_p9 }
  0xac   :  { %v328_v19 = vsel %vm626_vm8, %v602_v3, 1.0  ;;  %vm637_vm11 = vmand %vm271_vm9, %vm311_vm7 }
  0xad   :  { %440 = vlog2.f32 %v328_v19  ;;  %v327_v21 = vsel %vm637_vm11, %v609_v7, 1.0  ;;  %v302_v22 = vpop.permute.xlu1 %301  ;;  %v299_v23 = vpop.permute.xlu0 %298  ;;  %p482_p12 = pnand %p481_p11, %p475_p8 }
  0xae   :  { %442 = vlog2.f32 %v327_v21  ;;  %vm314_vm14 = vcmp.eq.s32.totalorder %v302_v22, 1  ;;  %vm313_vm15 = vcmp.eq.s32.totalorder %v299_v23, 1 }
  0xaf   :  { %vm646_vm1 = vmand %vm274_vm13, %vm314_vm14 }
  0xb0   :  { %v330_v27 = vsel %vm646_vm1, %v624_v15, 1.0  ;;  %vm656_vm4 = vmand %vm273_vm2, %vm313_vm15 }
  0xb1   :  { %444 = vlog2.f32 %v330_v27  ;;  %v329_v29 = vsel %vm656_vm4, %v631_v18, 1.0  ;;  %v308_v30 = vpop.permute.xlu1 %307  ;;  %v305_v31 = vpop.permute.xlu0 %304 }
  0xb2   :  { %446 = vlog2.f32 %v329_v29  ;;  %vm316_vm6 = vcmp.eq.s32.totalorder %v308_v30, 1  ;;  %vm315_vm7 = vcmp.eq.s32.totalorder %v305_v31, 1 }
  0xb3   :  { %vm663_vm9 = vmand %vm276_vm5, %vm316_vm6  ;;  %v437_v35 = vpop.eup %436 }
  0xb4   :  { %v332_v33 = vsel %vm663_vm9, %v268_v24, 1.0  ;;  %vm670_vm12 = vmand %vm275_vm10, %vm315_vm7  ;;  %v439_v37 = vpop.eup %438  ;;  %v336_v40 = vmul.f32 0.6931472, %v437_v35 }
  0xb5   :  { %448 = vlog2.f32 %v332_v33  ;;  %v331_v36 = vsel %vm670_vm12, %v651_v26, 1.0  ;;  %v334_v45 = vmul.f32 0.6931472, %v439_v37 }
  0xb6   :  { %450 = vlog2.f32 %v331_v36  ;;  %v350_v53 = vsub.f32 %v336_v40, %v140_v44 }
  0xb7   :  { %v441_v38 = vpop.eup %440  ;;  %v349_v56 = vsub.f32 %v334_v45, %v139_v47 }
  0xb8   :  { %v443_v39 = vpop.eup %442  ;;  %v340_v42 = vmul.f32 0.6931472, %v441_v38  ;;  %v358_v4 = vmul.f32 %v350_v53, %v595_v57 }
  0xb9   :  { %v338_v46 = vmul.f32 0.6931472, %v443_v39  ;;  %v357_v9 = vmul.f32 %v349_v56, %v597_v61 }
  0xba   :  { %v352_v49 = vsub.f32 %v340_v42, %v142_v41  ;;  %v366_v16 = vsel %vm604_vm0, %v358_v4, 0.0 }
  0xbb   :  { %v445_v48 = vpop.eup %444  ;;  %v351_v50 = vsub.f32 %v338_v46, %v141_v43  ;;  %v365_v61 = vsel %vm615_vm3, %v357_v9, 0.0 }
  0xbc   :  { %v447_v52 = vpop.eup %446  ;;  %v344_v54 = vmul.f32 0.6931472, %v445_v48  ;;  %v360_v62 = vmul.f32 %v352_v49, %v602_v3  ;;  %v373_v22 = vadd.f32 %v366_v16, %v365_v61 }
  0xbd   :  { %v342_v58 = vmul.f32 0.6931472, %v447_v52  ;;  %v359_v63 = vmul.f32 %v351_v50, %v609_v7 }
  0xbe   :  { %v354_v59 = vsub.f32 %v344_v54, %v144_v51  ;;  %v368_v13 = vsel %vm626_vm8, %v360_v62, 0.0 }
  0xbf   :  { %v449_v60 = vpop.eup %448  ;;  %v353_v0 = vsub.f32 %v342_v58, %v143_v55  ;;  %v367_v14 = vsel %vm637_vm11, %v359_v63, 0.0 }
  0xc0   :  { %v451_v2 = vpop.eup %450  ;;  %v348_v5 = vmul.f32 0.6931472, %v449_v60  ;;  %v362_v11 = vmul.f32 %v354_v59, %v624_v15  ;;  %v374_v21 = vadd.f32 %v368_v13, %v367_v14 }
  0xc1   :  { %v361_v3 = vmul.f32 %v353_v0, %v631_v18  ;;  %v346_v7 = vmul.f32 0.6931472, %v451_v2 }
  0xc2   :  { %v356_v12 = vsub.f32 %v348_v5, %v146_v1  ;;  %v370_v15 = vsel %vm646_vm1, %v362_v11, 0.0  ;;  %v377_v10 = vadd.f32 %v374_v21, %v373_v22 }
  0xc3   :  { %v355_v57 = vsub.f32 %v346_v7, %v145_v8  ;;  %v369_v18 = vsel %vm656_vm4, %v361_v3, 0.0 }
  0xc4   :  { %v364_v19 = vmul.f32 %v356_v12, %v268_v24  ;;  %v375_v23 = vadd.f32 %v370_v15, %v369_v18 }
  0xc5   :  { %v363_v17 = vmul.f32 %v355_v57, %v651_v26 }
  0xc6   :  { %v372_v20 = vsel %vm663_vm9, %v364_v19, 0.0 }
  0xc7   :  { %v371_v6 = vsel %vm670_vm12, %v363_v17, 0.0 }
  0xc8   :  { %v376_v24 = vadd.f32 %v372_v20, %v371_v6 }
  0xca   :  { %v378_v27 = vadd.f32 %v376_v24, %v375_v23 }
  0xcc   :  { %v379_v25 = vadd.f32 %v378_v27, %v377_v10 }
  0xce   :  { %390 = vst [vmem:[#allocation6] sm:$0xff] %v379_v25 }
  0xcf   :  { %485 = shalt.err (!%p482_p12)
}
  0xd0   :  { %s486_s15 = scalar_lea.hbm %s739_s3, 128 }
  0xd1   :  { %p487_p13 = scmp.ne.s32.totalorder %s739_s3, %s486_s15  ;;  %p490_p0 = scmp.lt.u32.totalorder %s486_s15, %s739_s3 }
  0xd3   :  { %p492_p1 = pnand %p490_p0, %p487_p13 }
  0xd5   :  { %495 = shalt.err (!%p492_p1)
}
  0xd6   :  { %404 = dma.vmem_to_hbm [thread:$0]  %s402_s11, 128, %s739_s3, [#allocation5]  }
  0xd7   :  { %498 = dma.done.wait [#allocation5], 128  }
  0xd8   :  { %499 = vsyncadd [#allocation5], 4294967168 }
  0xd9   :  { %412 = vsyncpa [#allocation4], 1 }
  0xda   :  { %413 = vsyncpa [#allocation5], 1 }

</bundles_post_ra>
